<compile_context>
chip_gen: v7x
topology: tpu7x:2x2x1
jax: 0.10.0
libtpu: 0.0.40
codegen_flags: <defaults>
</compile_context>

<pallas_src>
import math

import jax
import jax.numpy as jnp
from jax.experimental import pallas as pl
from jax.experimental.pallas import tpu as pltpu


def _spatial_dropout_kernel(x_ref, m_ref, o_ref):
    # x_ref / o_ref: (TB, TM, E) tile; m_ref: (TB, 1, E) per-(batch, feature)
    # keep mask pre-scaled by 1/(1-drop); broadcast over the middle axis.
    o_ref[...] = x_ref[...] * m_ref[...]


def _tile_plan(B, M, E, dtype):
    """Pick (TB, TM, vmem_limit_bytes): biggest VMEM-fitting tile, folded over
    batch when per-batch work is small, while keeping >=4 parallel grid steps
    whenever each step still moves a few MiB (feeds both v7x TensorCores)."""
    itemsize = jnp.dtype(dtype).itemsize
    sublane = {4: 8, 2: 16, 1: 32}.get(itemsize, 8)

    try:
        vmem_cap = pltpu.get_tpu_info().vmem_capacity_bytes
    except Exception:  # pragma: no cover - conservative fallback (v7x physical)
        vmem_cap = 64 * 1024 * 1024

    # 2 input + 2 output double-buffer copies of the (TB, TM, E) data tile
    # target ~65% of physical VMEM; mask buffers / scratch take the remainder.
    data_budget = int(vmem_cap * 0.65)
    row_bytes = E * itemsize
    max_rows = max(sublane, data_budget // (4 * row_bytes))

    if M >= max_rows:
        TB = 1
        TM = max(sublane, (min(M, max_rows) // sublane) * sublane)
    else:
        TM = M
        TB = max(1, min(B, max_rows // max(M, 1)))

    # Keep enough parallel grid steps for megacore (v7x), but never fragment a
    # problem so small that per-step HBM traffic drops below ~2 MiB.
    min_step_bytes = 2 * 1024 * 1024  # read + write per step after a split
    target_steps = 4

    def n_steps(tb, tm):
        return pl.cdiv(B, tb) * pl.cdiv(M, tm)

    def step_bytes(tb, tm):
        return 2 * tb * tm * row_bytes

    while n_steps(TB, TM) < target_steps:
        half_tm = max(sublane, ((TM // 2) // sublane) * sublane)
        if TB > 1 and step_bytes(max(1, TB // 2), TM) >= min_step_bytes:
            TB = max(1, TB // 2)
        elif half_tm < TM and step_bytes(TB, half_tm) >= min_step_bytes:
            TM = half_tm
        else:
            break

    # Explicit scoped-VMEM limit: double-buffered data + mask tiles + headroom,
    # capped below physical capacity (overrides v5e's 16 MiB scoped default).
    footprint = 4 * TB * TM * row_bytes + 4 * TB * row_bytes
    vmem_limit = min(int(vmem_cap * 0.85), max(32 << 20, footprint + (8 << 20)))
    vmem_limit = max(vmem_limit, footprint + (2 << 20))
    return TB, TM, vmem_limit


def spatial_dropout(x, *, drop=0.5, training=True, key=None, donate_input=False):
    """Forward pass of SpatialDropout with the default noise_shape (B, 1, ..., 1, E)."""
    # TODO(synk): user-supplied noise_shape (other than the PyTorch default) not implemented.
    if (not training) or drop == 0.0:
        return x
    if drop == 1.0:
        return jnp.zeros_like(x)
    if key is None:
        raise ValueError(
            "spatial_dropout: a PRNG `key` is required when training with 0 < drop < 1 "
            "(reusing a fixed key would reuse the same dropout mask every call).")

    orig_shape = x.shape
    B, E = x.shape[0], x.shape[-1]
    M = 1
    for d in x.shape[1:-1]:
        M *= d

    # Lane-density: if E isn't a multiple of 128, fold a factor g of M into the
    # lane axis so stores are unmasked / lane-dense (mask gets tiled g times).
    g = 1
    if E % 128 != 0 and M > 1:
        g_try = 128 // math.gcd(E, 128)
        if g_try > 1 and M % g_try == 0:
            g = g_try

    # One keep/drop decision per (batch, feature); build tiny mask in f32, cast
    # once to x.dtype so the streaming multiply runs natively in input dtype.
    keep = jax.random.bernoulli(key, p=1.0 - drop, shape=(B, 1, E))
    mask = (keep.astype(jnp.float32) * jnp.float32(1.0 / (1.0 - drop))).astype(x.dtype)

    Mk, Ek = M // g, E * g
    x3 = x.reshape(B, Mk, Ek)
    if g > 1:
        mask = jnp.tile(mask, (1, 1, g))

    TB, TM, vmem_limit = _tile_plan(B, Mk, Ek, x.dtype)
    itemsize = jnp.dtype(x.dtype).itemsize

    out = pl.pallas_call(
        _spatial_dropout_kernel,
        out_shape=jax.ShapeDtypeStruct((B, Mk, Ek), x.dtype),
        grid=(pl.cdiv(B, TB), pl.cdiv(Mk, TM)),  # M innermost: mask block reused across inner tiles
        in_specs=[
            pl.BlockSpec((TB, TM, Ek), lambda b, t: (b, t, 0)),
            pl.BlockSpec((TB, 1, Ek), lambda b, t: (b, 0, 0)),
        ],
        out_specs=pl.BlockSpec((TB, TM, Ek), lambda b, t: (b, t, 0)),
        compiler_params=pltpu.CompilerParams(
            dimension_semantics=("parallel", "parallel"),
            vmem_limit_bytes=vmem_limit),
        cost_estimate=pl.CostEstimate(
            flops=B * Mk * Ek,
            transcendentals=0,
            bytes_accessed=2 * B * Mk * Ek * itemsize + B * Ek * itemsize),
        input_output_aliases=({0: 0} if donate_input else {}),
    )(x3, mask)
    return out.reshape(orig_shape)


def _check(x, y, drop):
    """Every element is either dropped (0) or scaled by 1/(1-drop), with the
    keep/drop decision constant along the middle (timestep/spatial) axis."""
    scale = 1.0 / (1.0 - drop)
    B, E = x.shape[0], x.shape[-1]
    x3 = x.reshape(B, -1, E)
    y3 = y.reshape(B, -1, E)
    kept = jnp.any(jnp.abs(y3) > 0.0, axis=1, keepdims=True)  # (B, 1, E)
    ok = jnp.where(kept,
                   jnp.isclose(y3, scale * x3, atol=1e-5),
                   jnp.isclose(y3, 0.0, atol=1e-6))
    return bool(jnp.all(ok))


if __name__ == "__main__":
    root = jax.random.PRNGKey(0)
    k_data1, k_data2, k_drop1, k_drop2 = jax.random.split(root, 4)

    drop = 0.5

    # Embedding-style (batch, timesteps, hidden) with a lane-dense feature dim.
    x1 = jax.random.normal(k_data1, (2, 8, 128), dtype=jnp.float32)
    y1 = jax.block_until_ready(spatial_dropout(x1, drop=drop, training=True, key=k_drop1))

    # Feature dim not a multiple of 128 -> exercises the lane-folding path.
    x2 = jax.random.normal(k_data2, (2, 16, 48), dtype=jnp.float32)
    y2 = jax.block_until_ready(spatial_dropout(x2, drop=drop, training=True, key=k_drop2))

    ok = _check(x1, y1, drop) and _check(x2, y2, drop)
    # eval mode is the identity; drop=1 zeroes everything
    ok = ok and bool(jnp.array_equal(spatial_dropout(x1, drop=drop, training=False), x1))
    ok = ok and bool(jnp.all(spatial_dropout(x1, drop=1.0, training=True, key=k_drop1) == 0.0))

    assert ok
    print("KERNEL_OK")
</pallas_src>

<mosaic_0001>
module attributes {stable_mosaic.version = 11 : i64} {
  func.func @_spatial_dropout_kernel(%arg0: i32, %arg1: i32, %arg2: memref<2x8x128xf32, #tpu.memory_space<vmem>>, %arg3: memref<2x1x128xf32, #tpu.memory_space<vmem>>, %arg4: memref<2x8x128xf32, #tpu.memory_space<vmem>>) attributes {dimension_semantics = [#tpu.dimension_semantics<parallel>, #tpu.dimension_semantics<parallel>], iteration_bounds = array<i64: 1, 1>, scalar_prefetch = 0 : i64, scratch_operands = 0 : i64, tpu.core_type = #tpu.core_type<tc>, window_params = [{transform_indices = @transform_0, window_bounds = array<i64: 2, 8, 128>}, {transform_indices = @transform_1, window_bounds = array<i64: 2, 1, 128>}, {transform_indices = @transform_2, window_bounds = array<i64: 2, 8, 128>}]} {
    %c0 = arith.constant 0 : index
    %c0_0 = arith.constant 0 : index
    %c0_1 = arith.constant 0 : index
    %0 = vector.load %arg2[%c0, %c0_0, %c0_1] : memref<2x8x128xf32, #tpu.memory_space<vmem>>, vector<2x8x128xf32>
    %c0_2 = arith.constant 0 : index
    %c0_3 = arith.constant 0 : index
    %c0_4 = arith.constant 0 : index
    %1 = vector.load %arg3[%c0_2, %c0_3, %c0_4] : memref<2x1x128xf32, #tpu.memory_space<vmem>>, vector<2x1x128xf32>
    %2 = vector.broadcast %1 : vector<2x1x128xf32> to vector<2x8x128xf32>
    %3 = arith.mulf %0, %2 : vector<2x8x128xf32>
    %c0_5 = arith.constant 0 : index
    %c0_6 = arith.constant 0 : index
    %c0_7 = arith.constant 0 : index
    %4 = vector.load %arg4[%c0_5, %c0_6, %c0_7] : memref<2x8x128xf32, #tpu.memory_space<vmem>>, vector<2x8x128xf32>
    tpu.vector_store %arg4[%c0_5, %c0_6, %c0_7], %3 {strides = array<i32>} : memref<2x8x128xf32, #tpu.memory_space<vmem>>, vector<2x8x128xf32>,
    return
  }
  func.func @transform_0(%arg0: i32, %arg1: i32) -> (i32, i32, i32) {
    %c0_i32 = arith.constant 0 : i32
    %c0_i32_0 = arith.constant 0 : i32
    return %arg0, %arg1, %c0_i32 : i32, i32, i32
  }
  func.func @transform_1(%arg0: i32, %arg1: i32) -> (i32, i32, i32) {
    %c0_i32 = arith.constant 0 : i32
    %c0_i32_0 = arith.constant 0 : i32
    %c0_i32_1 = arith.constant 0 : i32
    return %arg0, %c0_i32, %c0_i32_0 : i32, i32, i32
  }
  func.func @transform_2(%arg0: i32, %arg1: i32) -> (i32, i32, i32) {
    %c0_i32 = arith.constant 0 : i32
    %c0_i32_0 = arith.constant 0 : i32
    return %arg0, %arg1, %c0_i32 : i32, i32, i32
  }
}

</mosaic_0001>

<bundles_post_ra>
// kernel: tpu_custom_call.1
= control target key start
LH: loop header
LB: loop body
LE: loop exit
PB: predicated region body
PF: predicated region fallthrough
CT: control target
= control target key end

     0   :  { %7 = vsyncpa [#allocation3], 0  ;;  %s172_s0 = inlined_call_operand.hbm [shape: f32[2,8,128], index: 0, kind: input, shape index: {}]   ;;  %s173_s1 = inlined_call_operand.vmem [shape: f32[2,1,128], index: 1, kind: input, shape index: {}]   ;;  %s174_s2 = inlined_call_operand.hbm [shape: f32[2,8,128], index: 2, kind: output, shape index: {}]  }
   0x1   :  { %8 = vsyncpa [#allocation4], 0  ;;  %s117_s9 = smov [#allocation2]   ;;  %s69_s13 = scalar_lea.hbm %s172_s0, 256 }
   0x2   :  { %s14_s10 = sshll.u32 %s117_s9, 4  ;;  %p70_p0 = scmp.ne.s32.totalorder %s172_s0, %s69_s13  ;;  %s15_s10 = int_to_ptr.vmem [resolvable:$true] %s14_s10 }
   0x3   :  { %p73_p1 = scmp.lt.u32.totalorder %s69_s13, %s172_s0 }
   0x5   :  { %p75_p2 = pnand %p73_p1, %p70_p0 }
   0x7   :  { %78 = shalt.err (!%p75_p2)
}
   0x8   :  { %s79_s18 = scalar_lea.vmem %s15_s10, 256  ;;  %p84_p4 = scmp.lt.s32.totalorder %s15_s10, %s15_s10 }
   0x9   :  { %p80_p3 = scmp.ne.s32.totalorder %s15_s10, %s79_s18  ;;  %p85_p5 = scmp.lt.s32.totalorder %s79_s18, %s79_s18 }
   0xb   :  { %p86_p6 = por %p85_p5, %p84_p4 }
   0xd   :  { %p87_p7 = pnand %p86_p6, %p80_p3 }
   0xf   :  { %90 = shalt.err (!%p87_p7)
}
  0x10   :  { %s118_s19 = smov 128   ;;  %s119_s20 = smov 8  }
  0x11   :  { %20 = dma.hbm_to_vmem [thread:$0]  %s172_s0, 256, %s15_s10, [#allocation3], %s118_s19, %s118_s19, %s119_s20  }
  0x12   :  { %113 = dma.done.wait [#allocation3], 256  }
  0x13   :  { %114 = vsyncadd [#allocation3], 4294967040  ;;  %s120_s23 = smov [#allocation5]   ;;  %v26_v0 = vld [vmem:[#allocation2] sm:$0xff]  ;;  %v27_v2 = vld [vmem:[#allocation2 + $0x8] sm:$0xff] }
  0x14   :  { %s51_s24 = sshll.u32 %s120_s23, 4  ;;  %v63_v1 = vld [vmem:[%s173_s1] ss:$0 sm:$0xff]  ;;  %v64_v4 = vld [vmem:[%s173_s1 + $0x1] ss:$0 sm:$0xff]  ;;  %s52_s24 = int_to_ptr.vmem [resolvable:$true] %s51_s24 }
  0x15   :  { %v42_v3 = vmul.f32 %v63_v1, %v26_v0  ;;  %v43_v5 = vmul.f32 %v64_v4, %v27_v2  ;;  %s91_s0 = scalar_lea.vmem %s52_s24, 256  ;;  %p96_p9 = scmp.lt.s32.totalorder %s52_s24, %s52_s24 }
  0x16   :  { %p92_p8 = scmp.ne.s32.totalorder %s52_s24, %s91_s0  ;;  %p97_p10 = scmp.lt.s32.totalorder %s91_s0, %s91_s0 }
  0x17   :  { %44 = vst [vmem:[#allocation5] sm:$0xff] %v42_v3  ;;  %45 = vst [vmem:[#allocation5 + $0x8] sm:$0xff] %v43_v5 }
  0x18   :  { %p98_p11 = por %p97_p10, %p96_p9 }
  0x1a   :  { %p99_p12 = pnand %p98_p11, %p92_p8 }
  0x1c   :  { %102 = shalt.err (!%p99_p12)
}
  0x1d   :  { %s103_s3 = scalar_lea.hbm %s174_s2, 256 }
  0x1e   :  { %p104_p13 = scmp.ne.s32.totalorder %s174_s2, %s103_s3  ;;  %p107_p0 = scmp.lt.u32.totalorder %s103_s3, %s174_s2 }
  0x20   :  { %p109_p1 = pnand %p107_p0, %p104_p13 }
  0x22   :  { %112 = shalt.err (!%p109_p1)
}
  0x23   :  { %57 = dma.vmem_to_hbm [thread:$0]  %s52_s24, 256, %s174_s2, [#allocation4], %s118_s19, %s118_s19, %s119_s20  }
  0x24   :  { %115 = dma.done.wait [#allocation4], 256  }
  0x25   :  { %116 = vsyncadd [#allocation4], 4294967040 }
  0x26   :  { %61 = vsyncpa [#allocation3], 1 }
  0x27   :  { %62 = vsyncpa [#allocation4], 1 }

</bundles_post_ra>
